<compile_context>
chip_gen: v5e
topology: v5e:2x2
jax: 0.10.0
libtpu: 0.0.40
codegen_flags: <defaults>
</compile_context>

<pallas_src>
import math
from functools import partial

import jax
import jax.numpy as jnp
from jax.experimental import pallas as pl
from jax.experimental.pallas import tpu as pltpu


# ---------------------------------------------------------------------------
# Weight preparation (do this once at init, not per forward call)
# ---------------------------------------------------------------------------

def prepare_self_attention_weights(w_query, w_mem, *, num_heads,
                                   heads_per_step=None,
                                   compute_dtype=jnp.bfloat16):
    """Stack the 1x1-conv weights into per-head-group fused QKV blocks.

    w_query: (D, D)    query_conv weight (kernel dim squeezed)
    w_mem:   (2D, D)   mem_conv weight   (rows [0:D] -> K, rows [D:2D] -> V)
    returns  (G, 3*rows, D) with G = num_heads // heads_per_step,
             rows = heads_per_step * head_dim; group g holds
             [Q rows; K rows; V rows] for heads g*hps .. (g+1)*hps-1.
    """
    D = w_query.shape[0]
    assert D % num_heads == 0
    hd = D // num_heads
    if heads_per_step is None:
        heads_per_step = num_heads
    assert num_heads % heads_per_step == 0
    G = num_heads // heads_per_step
    rows = heads_per_step * hd
    if G > 1:
        # (8,128) rule: the (rows, S) output block needs sublane-aligned rows.
        assert rows % 8 == 0, "heads_per_step * head_dim must be a multiple of 8"
    wq = w_query.reshape(G, rows, D)
    wk = w_mem[:D].reshape(G, rows, D)
    wv = w_mem[D:].reshape(G, rows, D)
    return jnp.concatenate([wq, wk, wv], axis=1).astype(compute_dtype)


# ---------------------------------------------------------------------------
# Fused projection + masked multi-head attention kernel
# ---------------------------------------------------------------------------

def _fused_self_attn_kernel(x_ref, w_ref, mask_ref, o_ref, *,
                            heads_per_step, head_dim, scale, compute_dtype):
    # x_ref:    (D, S)            input dtype (cast in-kernel -> no XLA cast pass)
    # w_ref:    (3*rows, D)       compute dtype, resident
    # mask_ref: (1, S)            f32 0/1
    # o_ref:    (rows, S)         rows = heads_per_step * head_dim
    rows = heads_per_step * head_dim
    x = x_ref[...].astype(compute_dtype)                               # (D, S)

    # Fused 1x1-conv projection for this head group: qkv never leaves VMEM.
    qkv = jnp.dot(w_ref[...], x, preferred_element_type=jnp.float32)   # (3*rows, S)
    q_all = qkv[0:rows]
    k_all = qkv[rows:2 * rows]
    v_all = qkv[2 * rows:3 * rows]

    m = mask_ref[...]                                                  # (1, S)
    neg = jnp.float32(-1e30)
    bf16_exp = compute_dtype == jnp.bfloat16                           # v6e/v7x win

    for i in range(heads_per_step):
        lo, hi = i * head_dim, (i + 1) * head_dim
        q = q_all[lo:hi].astype(compute_dtype)                         # (hd, S)
        k = k_all[lo:hi].astype(compute_dtype)
        v = v_all[lo:hi].astype(compute_dtype)

        # logits[sq, sk] = scale * sum_d q[d, sq] * k[d, sk]   (no transpose)
        s = jax.lax.dot_general(q, k, (((0,), (0,)), ((), ())),
                                preferred_element_type=jnp.float32) * scale
        s = jnp.where(m != 0.0, s, neg)                                # mask_logits
        s = s - jnp.max(s, axis=-1, keepdims=True)

        if bf16_exp:
            p = jnp.exp(s.astype(jnp.bfloat16))                        # bf16 EUP
        else:
            p = jnp.exp(s)
        row_sum = jnp.sum(p.astype(jnp.float32), axis=-1, keepdims=True)
        inv = pl.reciprocal(row_sum, approx=bf16_exp)                  # EUP recip
        alpha = (p * inv).astype(compute_dtype)                        # (S, S)
        # TODO(synk): training-mode dropout on alpha not implemented (eval no-op).

        # o[d, sq] = sum_sk v[d, sk] * alpha[sq, sk]  -> (hd, S), lane-dense store
        o = jax.lax.dot_general(v, alpha, (((1,), (1,)), ((), ())),
                                preferred_element_type=jnp.float32)
        o_ref[lo:hi, :] = o.astype(o_ref.dtype)


def self_attention(x, w_heads, mask, *, num_heads):
    """QANet SelfAttention forward (eval mode), fused Pallas kernel.

    x:       (b, model_dim, seq_len) float32
    w_heads: (G, 3*rows, model_dim)  from prepare_self_attention_weights
             (its dtype is the compute dtype)
    mask:    (b, seq_len) 0/1
    returns  (b, model_dim, seq_len) in x.dtype
    """
    B, D, S = x.shape
    assert D % num_heads == 0
    hd = D // num_heads
    G = w_heads.shape[0]
    assert num_heads % G == 0
    heads_per_step = num_heads // G
    rows = heads_per_step * hd
    assert w_heads.shape == (G, 3 * rows, D)
    compute_dtype = w_heads.dtype
    out_dtype = x.dtype
    scale = float(hd) ** -0.5

    mask3 = mask.astype(jnp.float32).reshape(B, 1, S)

    in_isz = jnp.dtype(x.dtype).itemsize
    w_isz = jnp.dtype(compute_dtype).itemsize
    cost = pl.CostEstimate(
        flops=int(2 * B * 3 * D * D * S + 4 * B * S * S * D),
        transcendentals=int(B * num_heads * S * S),
        bytes_accessed=int(B * D * S * in_isz + 3 * D * D * w_isz + B * S * 4
                           + B * D * S * jnp.dtype(out_dtype).itemsize),
    )

    kernel = partial(_fused_self_attn_kernel,
                     heads_per_step=heads_per_step, head_dim=hd,
                     scale=scale, compute_dtype=compute_dtype)

    # Grid = (batch, head-group). x's block index is independent of the group
    # axis -> x is read from HBM once per batch; both axes "parallel" so v7x's
    # two TensorCores split B*G steps.
    # TODO(synk): on v7x with batch==1, build w_heads with heads_per_step =
    # num_heads//2 so the parallel grid extent is >= 2.
    return pl.pallas_call(
        kernel,
        out_shape=jax.ShapeDtypeStruct((B, D, S), out_dtype),
        grid_spec=pltpu.PrefetchScalarGridSpec(
            num_scalar_prefetch=0,
            grid=(B, G),
            in_specs=[
                pl.BlockSpec((pl.Squeezed(), D, S), lambda b, g: (b, 0, 0)),
                pl.BlockSpec((pl.Squeezed(), 3 * rows, D), lambda b, g: (g, 0, 0)),
                pl.BlockSpec((pl.Squeezed(), 1, S), lambda b, g: (b, 0, 0)),
            ],
            out_specs=pl.BlockSpec((pl.Squeezed(), rows, S),
                                   lambda b, g: (b, g, 0)),
        ),
        compiler_params=pltpu.CompilerParams(
            dimension_semantics=("parallel", "parallel"),
        ),
        cost_estimate=cost,
    )(x, w_heads, mask3)


# ---------------------------------------------------------------------------
# Pure-JAX reference + synthetic init (matches the module's __init__)
# ---------------------------------------------------------------------------

def self_attention_ref(x, w_query, w_mem, mask, *, num_heads):
    b, D, S = x.shape
    hd = D // num_heads
    memory = jnp.einsum("oc,ncl->nol", w_mem, x)                   # (b, 2D, S)
    memory = jnp.transpose(memory, (0, 2, 1))                      # (b, S, 2D)
    query = jnp.einsum("oc,ncl->nol", w_query, x)                  # (b, D, S)
    Q = jnp.transpose(query, (0, 2, 1)).reshape(b, S, num_heads, hd)
    Q = jnp.transpose(Q, (0, 2, 1, 3))
    K = jnp.transpose(memory[:, :, :D].reshape(b, S, num_heads, hd), (0, 2, 1, 3))
    V = jnp.transpose(memory[:, :, D:].reshape(b, S, num_heads, hd), (0, 2, 1, 3))
    Q = Q * float(hd) ** -0.5
    logits = jnp.einsum("bhqd,bhkd->bhqk", Q, K)
    m = mask.astype(jnp.float32).reshape(b, 1, 1, S)
    logits = logits * m + (1.0 - m) * -1e30                        # mask_logits
    alpha = jax.nn.softmax(logits, axis=-1)
    attn = jnp.einsum("bhqk,bhkd->bhqd", alpha, V)
    attn = jnp.transpose(attn, (0, 2, 1, 3)).reshape(b, S, D)
    return jnp.transpose(attn, (0, 2, 1))


def xavier_uniform_conv1d(key, in_channels, out_channels, kernel_size=1):
    """nn.init.xavier_uniform_ on a Conv1d weight (C_out, C_in, k), k=1 squeezed."""
    fan_in = in_channels * kernel_size
    fan_out = out_channels * kernel_size
    bound = math.sqrt(6.0 / (fan_in + fan_out))
    w = jax.random.uniform(key, (out_channels, in_channels, kernel_size),
                           dtype=jnp.float32, minval=-bound, maxval=bound)
    return w[:, :, 0]


if __name__ == "__main__":
    key = jax.random.PRNGKey(0)
    kx, kq, km = jax.random.split(key, 3)

    # Small shapes consistent with the module: x is (b, model_dim, seq_len).
    b, model_dim, num_heads, seq_len = 2, 32, 4, 16
    x = jax.random.normal(kx, (b, model_dim, seq_len), dtype=jnp.float32)

    # mask: 1 for valid positions, 0 for padding (second example is padded).
    lengths = jnp.array([seq_len, seq_len - 5], dtype=jnp.int32)
    mask = (jnp.arange(seq_len)[None, :] < lengths[:, None]).astype(jnp.float32)

    w_query = xavier_uniform_conv1d(kq, model_dim, model_dim)        # (D, D)
    w_mem = xavier_uniform_conv1d(km, model_dim, 2 * model_dim)      # (2D, D)

    ref = self_attention_ref(x, w_query, w_mem, mask, num_heads=num_heads)

    # f32 compute path: tight structural check.
    wh_f32 = prepare_self_attention_weights(
        w_query, w_mem, num_heads=num_heads, compute_dtype=jnp.float32)
    out_f32 = jax.block_until_ready(
        self_attention(x, wh_f32, mask, num_heads=num_heads))
    assert out_f32.shape == (b, model_dim, seq_len)
    assert jnp.allclose(out_f32, ref, atol=2e-3, rtol=2e-3)

    # bf16 compute path (deployment config on v6e/v7x): looser tolerance.
    wh_bf16 = prepare_self_attention_weights(
        w_query, w_mem, num_heads=num_heads, compute_dtype=jnp.bfloat16)
    out_bf16 = jax.block_until_ready(
        self_attention(x, wh_bf16, mask, num_heads=num_heads))
    assert out_bf16.shape == (b, model_dim, seq_len)
    assert jnp.allclose(out_bf16.astype(jnp.float32), ref, atol=1e-1, rtol=1e-1)

    print("KERNEL_OK")
</pallas_src>

<mosaic_0001>
module attributes {stable_mosaic.version = 11 : i64} {
  func.func @_fused_self_attn_kernel(%arg0: i32, %arg1: i32, %arg2: memref<1x32x16xf32, #tpu.memory_space<vmem>>, %arg3: memref<1x96x32xf32, #tpu.memory_space<vmem>>, %arg4: memref<1x1x16xf32, #tpu.memory_space<vmem>>, %arg5: memref<1x32x16xf32, #tpu.memory_space<vmem>>) attributes {dimension_semantics = [#tpu.dimension_semantics<parallel>, #tpu.dimension_semantics<parallel>], iteration_bounds = array<i64: 2, 1>, scalar_prefetch = 0 : i64, scratch_operands = 0 : i64, tpu.core_type = #tpu.core_type<tc>, window_params = [{transform_indices = @transform_0, window_bounds = array<i64: 1, 32, 16>}, {transform_indices = @transform_1, window_bounds = array<i64: 1, 96, 32>}, {transform_indices = @transform_2, window_bounds = array<i64: 1, 1, 16>}, {transform_indices = @transform_3, window_bounds = array<i64: 1, 32, 16>}]} {
    %c0 = arith.constant 0 : index
    %c0_0 = arith.constant 0 : index
    %c0_1 = arith.constant 0 : index
    %0 = vector.load %arg2[%c0, %c0_0, %c0_1] : memref<1x32x16xf32, #tpu.memory_space<vmem>>, vector<1x32x16xf32>
    %1 = vector.shape_cast %0 : vector<1x32x16xf32> to vector<32x16xf32>
    %c0_2 = arith.constant 0 : index
    %c0_3 = arith.constant 0 : index
    %c0_4 = arith.constant 0 : index
    %2 = vector.load %arg3[%c0_2, %c0_3, %c0_4] : memref<1x96x32xf32, #tpu.memory_space<vmem>>, vector<1x96x32xf32>
    %3 = vector.shape_cast %2 : vector<1x96x32xf32> to vector<96x32xf32>
    %cst = arith.constant dense<0.000000e+00> : vector<96x16xf32>
    %4 = tpu.matmul %3, %1, %cst {dimension_numbers = #tpu.dot_dimension_numbers<[1], [0], [0], [1], [0, 0, 1, 1], [], []>} : vector<96x32xf32>, vector<32x16xf32>, vector<96x16xf32> -> vector<96x16xf32>
    %5 = vector.extract_strided_slice %4 {offsets = [0, 0], sizes = [32, 16], strides = [1, 1]} : vector<96x16xf32> to vector<32x16xf32>
    %6 = vector.extract_strided_slice %4 {offsets = [32, 0], sizes = [32, 16], strides = [1, 1]} : vector<96x16xf32> to vector<32x16xf32>
    %7 = vector.extract_strided_slice %4 {offsets = [64, 0], sizes = [32, 16], strides = [1, 1]} : vector<96x16xf32> to vector<32x16xf32>
    %c0_5 = arith.constant 0 : index
    %c0_6 = arith.constant 0 : index
    %c0_7 = arith.constant 0 : index
    %8 = vector.load %arg4[%c0_5, %c0_6, %c0_7] : memref<1x1x16xf32, #tpu.memory_space<vmem>>, vector<1x1x16xf32>
    %9 = vector.shape_cast %8 : vector<1x1x16xf32> to vector<1x16xf32>
    %10 = vector.extract_strided_slice %5 {offsets = [0, 0], sizes = [8, 16], strides = [1, 1]} : vector<32x16xf32> to vector<8x16xf32>
    %11 = vector.extract_strided_slice %6 {offsets = [0, 0], sizes = [8, 16], strides = [1, 1]} : vector<32x16xf32> to vector<8x16xf32>
    %12 = vector.extract_strided_slice %7 {offsets = [0, 0], sizes = [8, 16], strides = [1, 1]} : vector<32x16xf32> to vector<8x16xf32>
    %cst_8 = arith.constant dense<0.000000e+00> : vector<16x16xf32>
    %13 = tpu.matmul %10, %11, %cst_8 {dimension_numbers = #tpu.dot_dimension_numbers<[0], [0], [1], [1], [0, 1, 1, 1], [], []>} : vector<8x16xf32>, vector<8x16xf32>, vector<16x16xf32> -> vector<16x16xf32>
    %cst_9 = arith.constant 0.353553385 : f32
    %14 = vector.broadcast %cst_9 : f32 to vector<16x16xf32>
    %15 = arith.mulf %13, %14 : vector<16x16xf32>
    %cst_10 = arith.constant 0.000000e+00 : f32
    %16 = vector.broadcast %cst_10 : f32 to vector<1x16xf32>
    %17 = arith.cmpf one, %9, %16 : vector<1x16xf32>
    %cst_11 = arith.constant -1.000000e+30 : f32
    %18 = vector.shape_cast %17 : vector<1x16xi1> to vector<1x16xi1>
    %19 = vector.broadcast %18 : vector<1x16xi1> to vector<16x16xi1>
    %20 = vector.broadcast %cst_11 : f32 to vector<16x16xf32>
    %21 = arith.select %19, %15, %20 : vector<16x16xi1>, vector<16x16xf32>
    %cst_12 = arith.constant dense<0xFF800000> : vector<16xf32>
    %22 = vector.multi_reduction <maximumf>, %21, %cst_12 [1] : vector<16x16xf32> to vector<16xf32>
    %23 = vector.shape_cast %22 : vector<16xf32> to vector<16x1xf32>
    %24 = vector.broadcast %23 : vector<16x1xf32> to vector<16x16xf32>
    %25 = arith.subf %21, %24 : vector<16x16xf32>
    %26 = math.exp %25 : vector<16x16xf32>
    %cst_13 = arith.constant dense<0.000000e+00> : vector<16xf32>
    %27 = vector.multi_reduction <add>, %26, %cst_13 [1] : vector<16x16xf32> to vector<16xf32>
    %28 = vector.shape_cast %27 : vector<16xf32> to vector<16x1xf32>
    %29 = tpu.reciprocal %28 : vector<16x1xf32> -> vector<16x1xf32>
    %30 = vector.broadcast %29 : vector<16x1xf32> to vector<16x16xf32>
    %31 = arith.mulf %26, %30 : vector<16x16xf32>
    %cst_14 = arith.constant dense<0.000000e+00> : vector<8x16xf32>
    %32 = tpu.matmul %12, %31, %cst_14 {dimension_numbers = #tpu.dot_dimension_numbers<[1], [1], [0], [0], [0, 0, 1, 0], [], []>} : vector<8x16xf32>, vector<16x16xf32>, vector<8x16xf32> -> vector<8x16xf32>
    %c0_15 = arith.constant 0 : index
    %c0_16 = arith.constant 0 : index
    %c0_17 = arith.constant 0 : index
    %33 = vector.load %arg5[%c0_15, %c0_16, %c0_17] : memref<1x32x16xf32, #tpu.memory_space<vmem>>, vector<1x8x16xf32>
    %34 = vector.shape_cast %33 : vector<1x8x16xf32> to vector<8x16xf32>
    %35 = vector.shape_cast %32 : vector<8x16xf32> to vector<1x8x16xf32>
    tpu.vector_store %arg5[%c0_15, %c0_16, %c0_17], %35 {strides = array<i32>} : memref<1x32x16xf32, #tpu.memory_space<vmem>>, vector<1x8x16xf32>,
    %36 = vector.extract_strided_slice %5 {offsets = [8, 0], sizes = [8, 16], strides = [1, 1]} : vector<32x16xf32> to vector<8x16xf32>
    %37 = vector.extract_strided_slice %6 {offsets = [8, 0], sizes = [8, 16], strides = [1, 1]} : vector<32x16xf32> to vector<8x16xf32>
    %38 = vector.extract_strided_slice %7 {offsets = [8, 0], sizes = [8, 16], strides = [1, 1]} : vector<32x16xf32> to vector<8x16xf32>
    %cst_18 = arith.constant dense<0.000000e+00> : vector<16x16xf32>
    %39 = tpu.matmul %36, %37, %cst_18 {dimension_numbers = #tpu.dot_dimension_numbers<[0], [0], [1], [1], [0, 1, 1, 1], [], []>} : vector<8x16xf32>, vector<8x16xf32>, vector<16x16xf32> -> vector<16x16xf32>
    %cst_19 = arith.constant 0.353553385 : f32
    %40 = vector.broadcast %cst_19 : f32 to vector<16x16xf32>
    %41 = arith.mulf %39, %40 : vector<16x16xf32>
    %cst_20 = arith.constant 0.000000e+00 : f32
    %42 = vector.broadcast %cst_20 : f32 to vector<1x16xf32>
    %43 = arith.cmpf one, %9, %42 : vector<1x16xf32>
    %cst_21 = arith.constant -1.000000e+30 : f32
    %44 = vector.shape_cast %43 : vector<1x16xi1> to vector<1x16xi1>
    %45 = vector.broadcast %44 : vector<1x16xi1> to vector<16x16xi1>
    %46 = vector.broadcast %cst_21 : f32 to vector<16x16xf32>
    %47 = arith.select %45, %41, %46 : vector<16x16xi1>, vector<16x16xf32>
    %cst_22 = arith.constant dense<0xFF800000> : vector<16xf32>
    %48 = vector.multi_reduction <maximumf>, %47, %cst_22 [1] : vector<16x16xf32> to vector<16xf32>
    %49 = vector.shape_cast %48 : vector<16xf32> to vector<16x1xf32>
    %50 = vector.broadcast %49 : vector<16x1xf32> to vector<16x16xf32>
    %51 = arith.subf %47, %50 : vector<16x16xf32>
    %52 = math.exp %51 : vector<16x16xf32>
    %cst_23 = arith.constant dense<0.000000e+00> : vector<16xf32>
    %53 = vector.multi_reduction <add>, %52, %cst_23 [1] : vector<16x16xf32> to vector<16xf32>
    %54 = vector.shape_cast %53 : vector<16xf32> to vector<16x1xf32>
    %55 = tpu.reciprocal %54 : vector<16x1xf32> -> vector<16x1xf32>
    %56 = vector.broadcast %55 : vector<16x1xf32> to vector<16x16xf32>
    %57 = arith.mulf %52, %56 : vector<16x16xf32>
    %cst_24 = arith.constant dense<0.000000e+00> : vector<8x16xf32>
    %58 = tpu.matmul %38, %57, %cst_24 {dimension_numbers = #tpu.dot_dimension_numbers<[1], [1], [0], [0], [0, 0, 1, 0], [], []>} : vector<8x16xf32>, vector<16x16xf32>, vector<8x16xf32> -> vector<8x16xf32>
    %c0_25 = arith.constant 0 : index
    %c8 = arith.constant 8 : index
    %c0_26 = arith.constant 0 : index
    %59 = vector.load %arg5[%c0_25, %c8, %c0_26] : memref<1x32x16xf32, #tpu.memory_space<vmem>>, vector<1x8x16xf32>
    %60 = vector.shape_cast %59 : vector<1x8x16xf32> to vector<8x16xf32>
    %61 = vector.shape_cast %58 : vector<8x16xf32> to vector<1x8x16xf32>
    tpu.vector_store %arg5[%c0_25, %c8, %c0_26], %61 {strides = array<i32>} : memref<1x32x16xf32, #tpu.memory_space<vmem>>, vector<1x8x16xf32>,
    %62 = vector.extract_strided_slice %5 {offsets = [16, 0], sizes = [8, 16], strides = [1, 1]} : vector<32x16xf32> to vector<8x16xf32>
    %63 = vector.extract_strided_slice %6 {offsets = [16, 0], sizes = [8, 16], strides = [1, 1]} : vector<32x16xf32> to vector<8x16xf32>
    %64 = vector.extract_strided_slice %7 {offsets = [16, 0], sizes = [8, 16], strides = [1, 1]} : vector<32x16xf32> to vector<8x16xf32>
    %cst_27 = arith.constant dense<0.000000e+00> : vector<16x16xf32>
    %65 = tpu.matmul %62, %63, %cst_27 {dimension_numbers = #tpu.dot_dimension_numbers<[0], [0], [1], [1], [0, 1, 1, 1], [], []>} : vector<8x16xf32>, vector<8x16xf32>, vector<16x16xf32> -> vector<16x16xf32>
    %cst_28 = arith.constant 0.353553385 : f32
    %66 = vector.broadcast %cst_28 : f32 to vector<16x16xf32>
    %67 = arith.mulf %65, %66 : vector<16x16xf32>
    %cst_29 = arith.constant 0.000000e+00 : f32
    %68 = vector.broadcast %cst_29 : f32 to vector<1x16xf32>
    %69 = arith.cmpf one, %9, %68 : vector<1x16xf32>
    %cst_30 = arith.constant -1.000000e+30 : f32
    %70 = vector.shape_cast %69 : vector<1x16xi1> to vector<1x16xi1>
    %71 = vector.broadcast %70 : vector<1x16xi1> to vector<16x16xi1>
    %72 = vector.broadcast %cst_30 : f32 to vector<16x16xf32>
    %73 = arith.select %71, %67, %72 : vector<16x16xi1>, vector<16x16xf32>
    %cst_31 = arith.constant dense<0xFF800000> : vector<16xf32>
    %74 = vector.multi_reduction <maximumf>, %73, %cst_31 [1] : vector<16x16xf32> to vector<16xf32>
    %75 = vector.shape_cast %74 : vector<16xf32> to vector<16x1xf32>
    %76 = vector.broadcast %75 : vector<16x1xf32> to vector<16x16xf32>
    %77 = arith.subf %73, %76 : vector<16x16xf32>
    %78 = math.exp %77 : vector<16x16xf32>
    %cst_32 = arith.constant dense<0.000000e+00> : vector<16xf32>
    %79 = vector.multi_reduction <add>, %78, %cst_32 [1] : vector<16x16xf32> to vector<16xf32>
    %80 = vector.shape_cast %79 : vector<16xf32> to vector<16x1xf32>
    %81 = tpu.reciprocal %80 : vector<16x1xf32> -> vector<16x1xf32>
    %82 = vector.broadcast %81 : vector<16x1xf32> to vector<16x16xf32>
    %83 = arith.mulf %78, %82 : vector<16x16xf32>
    %cst_33 = arith.constant dense<0.000000e+00> : vector<8x16xf32>
    %84 = tpu.matmul %64, %83, %cst_33 {dimension_numbers = #tpu.dot_dimension_numbers<[1], [1], [0], [0], [0, 0, 1, 0], [], []>} : vector<8x16xf32>, vector<16x16xf32>, vector<8x16xf32> -> vector<8x16xf32>
    %c0_34 = arith.constant 0 : index
    %c16 = arith.constant 16 : index
    %c0_35 = arith.constant 0 : index
    %85 = vector.load %arg5[%c0_34, %c16, %c0_35] : memref<1x32x16xf32, #tpu.memory_space<vmem>>, vector<1x8x16xf32>
    %86 = vector.shape_cast %85 : vector<1x8x16xf32> to vector<8x16xf32>
    %87 = vector.shape_cast %84 : vector<8x16xf32> to vector<1x8x16xf32>
    tpu.vector_store %arg5[%c0_34, %c16, %c0_35], %87 {strides = array<i32>} : memref<1x32x16xf32, #tpu.memory_space<vmem>>, vector<1x8x16xf32>,
    %88 = vector.extract_strided_slice %5 {offsets = [24, 0], sizes = [8, 16], strides = [1, 1]} : vector<32x16xf32> to vector<8x16xf32>
    %89 = vector.extract_strided_slice %6 {offsets = [24, 0], sizes = [8, 16], strides = [1, 1]} : vector<32x16xf32> to vector<8x16xf32>
    %90 = vector.extract_strided_slice %7 {offsets = [24, 0], sizes = [8, 16], strides = [1, 1]} : vector<32x16xf32> to vector<8x16xf32>
    %cst_36 = arith.constant dense<0.000000e+00> : vector<16x16xf32>
    %91 = tpu.matmul %88, %89, %cst_36 {dimension_numbers = #tpu.dot_dimension_numbers<[0], [0], [1], [1], [0, 1, 1, 1], [], []>} : vector<8x16xf32>, vector<8x16xf32>, vector<16x16xf32> -> vector<16x16xf32>
    %cst_37 = arith.constant 0.353553385 : f32
    %92 = vector.broadcast %cst_37 : f32 to vector<16x16xf32>
    %93 = arith.mulf %91, %92 : vector<16x16xf32>
    %cst_38 = arith.constant 0.000000e+00 : f32
    %94 = vector.broadcast %cst_38 : f32 to vector<1x16xf32>
    %95 = arith.cmpf one, %9, %94 : vector<1x16xf32>
    %cst_39 = arith.constant -1.000000e+30 : f32
    %96 = vector.shape_cast %95 : vector<1x16xi1> to vector<1x16xi1>
    %97 = vector.broadcast %96 : vector<1x16xi1> to vector<16x16xi1>
    %98 = vector.broadcast %cst_39 : f32 to vector<16x16xf32>
    %99 = arith.select %97, %93, %98 : vector<16x16xi1>, vector<16x16xf32>
    %cst_40 = arith.constant dense<0xFF800000> : vector<16xf32>
    %100 = vector.multi_reduction <maximumf>, %99, %cst_40 [1] : vector<16x16xf32> to vector<16xf32>
    %101 = vector.shape_cast %100 : vector<16xf32> to vector<16x1xf32>
    %102 = vector.broadcast %101 : vector<16x1xf32> to vector<16x16xf32>
    %103 = arith.subf %99, %102 : vector<16x16xf32>
    %104 = math.exp %103 : vector<16x16xf32>
    %cst_41 = arith.constant dense<0.000000e+00> : vector<16xf32>
    %105 = vector.multi_reduction <add>, %104, %cst_41 [1] : vector<16x16xf32> to vector<16xf32>
    %106 = vector.shape_cast %105 : vector<16xf32> to vector<16x1xf32>
    %107 = tpu.reciprocal %106 : vector<16x1xf32> -> vector<16x1xf32>
    %108 = vector.broadcast %107 : vector<16x1xf32> to vector<16x16xf32>
    %109 = arith.mulf %104, %108 : vector<16x16xf32>
    %cst_42 = arith.constant dense<0.000000e+00> : vector<8x16xf32>
    %110 = tpu.matmul %90, %109, %cst_42 {dimension_numbers = #tpu.dot_dimension_numbers<[1], [1], [0], [0], [0, 0, 1, 0], [], []>} : vector<8x16xf32>, vector<16x16xf32>, vector<8x16xf32> -> vector<8x16xf32>
    %c0_43 = arith.constant 0 : index
    %c24 = arith.constant 24 : index
    %c0_44 = arith.constant 0 : index
    %111 = vector.load %arg5[%c0_43, %c24, %c0_44] : memref<1x32x16xf32, #tpu.memory_space<vmem>>, vector<1x8x16xf32>
    %112 = vector.shape_cast %111 : vector<1x8x16xf32> to vector<8x16xf32>
    %113 = vector.shape_cast %110 : vector<8x16xf32> to vector<1x8x16xf32>
    tpu.vector_store %arg5[%c0_43, %c24, %c0_44], %113 {strides = array<i32>} : memref<1x32x16xf32, #tpu.memory_space<vmem>>, vector<1x8x16xf32>,
    return
  }
  func.func @transform_0(%arg0: i32, %arg1: i32) -> (i32, i32, i32) {
    %c0_i32 = arith.constant 0 : i32
    %c0_i32_0 = arith.constant 0 : i32
    %c0_i32_1 = arith.constant 0 : i32
    return %arg0, %c0_i32, %c0_i32_0 : i32, i32, i32
  }
  func.func @transform_1(%arg0: i32, %arg1: i32) -> (i32, i32, i32) {
    %c0_i32 = arith.constant 0 : i32
    %c0_i32_0 = arith.constant 0 : i32
    %c0_i32_1 = arith.constant 0 : i32
    return %arg1, %c0_i32, %c0_i32_0 : i32, i32, i32
  }
  func.func @transform_2(%arg0: i32, %arg1: i32) -> (i32, i32, i32) {
    %c0_i32 = arith.constant 0 : i32
    %c0_i32_0 = arith.constant 0 : i32
    %c0_i32_1 = arith.constant 0 : i32
    return %arg0, %c0_i32, %c0_i32_0 : i32, i32, i32
  }
  func.func @transform_3(%arg0: i32, %arg1: i32) -> (i32, i32, i32) {
    %c0_i32 = arith.constant 0 : i32
    %c0_i32_0 = arith.constant 0 : i32
    return %arg0, %arg1, %c0_i32 : i32, i32, i32
  }
}

</mosaic_0001>

<bundles_post_ra>
// kernel: tpu_custom_call.1
= control target key start
LH: loop header
LB: loop body
LE: loop exit
PB: predicated region body
PF: predicated region fallthrough
CT: control target
= control target key end

     0   :  { %s1179_s12 = smov 0   ;;  %s1181_s13 = smov 0   ;;  %s1368_s0 = inlined_call_operand.vmem [shape: f32[2,32,16], index: 0, kind: input, shape index: {}]   ;;  %s1369_s1 = inlined_call_operand.vmem [shape: f32[1,96,32], index: 1, kind: input, shape index: {}]   ;;  %s1370_s2 = inlined_call_operand.vmem [shape: f32[2,1,16], index: 2, kind: input, shape index: {}]   ;;  %s1371_s3 = inlined_call_operand.vmem [shape: f32[2,32,16], index: 3, kind: output, shape index: {}]  }
   0x1   :  { %s1183_s14 = smov 0  }
   0x2 LB: > { %s25_s15 = sadd.s32 1, %s1152_s13  ;;  %p1023_p0 = scmp.ge.s32.totalorder %s1156_s14, 1  ;;  %s1156_s14 = sphi %s1183_s14, %s13_s14   ;;  %s1152_s13 = sphi %s1181_s13, %s1375_s13   ;;  %s1148_s12 = sphi %s1179_s12, %s1374_s12  }
   0x3   : > { %p27_p1 = scmp.ge.s32.totalorder %s25_s15, 2  ;;  %p169_p2 = scmp.lt.s32.totalorder %s1156_s14, 3 }
   0x5   : > { %s1377_s15 = smov (%p27_p1, %s25_s15), 0  ;;  %p170_p3 = pnand %p1023_p0, %p169_p2 }
   0x6   : > { %p205_p4 = scmp.lt.s32.totalorder (!%p170_p3), %s1148_s12, 1 }
   0x7   : > { %173 = sbr.rel (%p170_p3) target bundleno = 1384 (0x568), region = 32 }
   0xc   : > { %s1379_s12 = smov (!%p205_p4, %s1148_s12), 1  ;;  %v232_v4 = vld [vmem:[%s1369_s1] sm:$0xff]  ;;  %vm244_vm0 = vcmask 261120   ;;  %v233_v5 = vld [vmem:[%s1369_s1 + $0x8] sm:$0xff]  ;;  %v234_v6 = vld [vmem:[%s1369_s1 + $0x10] sm:$0xff]  ;;  %vm367_vm1 = vcmask 64512  }
   0xd   : > { %s1062_s16 = sshll.u32 %s1379_s12, 5  ;;  %v235_v7 = vld [vmem:[%s1369_s1 + $0x18] sm:$0xff]  ;;  %v236_v8 = vld [vmem:[%s1369_s1 + $0x20] sm:$0xff]  ;;  %v237_v9 = vld [vmem:[%s1369_s1 + $0x28] sm:$0xff]  ;;  %s217_s20 = scalar_lea.vmem %s1370_s2, %s1379_s12  ;;  %v1158_v29 = vmov 0   ;;  %vm405_vm4 = vcmask 130048  }
   0xe   : > { %s209_s19 = scalar_lea.vmem %s1368_s0, %s1062_s16  ;;  %v238_v12 = vld [vmem:[%s1369_s1 + $0x30] sm:$0xff]  ;;  %v239_v13 = vld [vmem:[%s1369_s1 + $0x38] sm:$0xff]  ;;  %v334_v26 = vld [vmem:[%s217_s20] sm:$0x1]  ;;  %s1317_s27 = scalar_lea.vmem %s1371_s3, %s1062_s16 }
   0xf   : > { %v231_v0 = vld [vmem:[%s209_s19 + $0x18] sm:$0xff]  ;;  %v230_v1 = vld [vmem:[%s209_s19 + $0x10] sm:$0xff]  ;;  %v229_v2 = vld [vmem:[%s209_s19 + $0x8] sm:$0xff]  ;;  %vm399_vm2 = vcmp.ne.f32.partialorder %v334_v26, 0.0 }
  0x10   : > { %293 = vmatpush.msra.mxu0 %v231_v0  ;;  %1064 = vmatpush.msra.mxu1 %v231_v0  ;;  %v228_v3 = vld [vmem:[%s209_s19] sm:$0xff]  ;;  %v242_v18 = vld [vmem:[%s1369_s1 + $0x50] sm:$0xff]  ;;  %v243_v19 = vld [vmem:[%s1369_s1 + $0x58] sm:$0xff]  ;;  %v400_v30 = vsel %vm399_vm2, 1, %v1158_v29 }
  0x11   : > { %1066 = vmatpush.msra.mxu3 %v231_v0  ;;  %1065 = vmatpush.msra.mxu2 %v231_v0  ;;  %v401_v31 = vperm.slane %v400_v30, 0  ;;  %v240_v56 = vld [vmem:[%s1369_s1 + $0x40] sm:$0xff] }
  0x12   : > { %294 = vmatpush.msra.mxu0 %v230_v1  ;;  %1067 = vmatpush.msra.mxu1 %v230_v1 }
  0x13   : > { %1069 = vmatpush.msra.mxu3 %v230_v1  ;;  %1068 = vmatpush.msra.mxu2 %v230_v1  ;;  %vm1261_vm3 = vcmp.eq.s32.totalorder %v401_v31, 1 }
  0x14   : > { %295 = vmatpush.msra.mxu0 %v229_v2  ;;  %1070 = vmatpush.msra.mxu1 %v229_v2 }
  0x15   : > { %1072 = vmatpush.msra.mxu3 %v229_v2  ;;  %1071 = vmatpush.msra.mxu2 %v229_v2 }
  0x16   : > { %296 = vmatpush.msra.mxu0 %v228_v3  ;;  %1073 = vmatpush.msra.mxu1 %v228_v3 }
  0x17   : > { %1028 = vmatmul.msk.f32.vlgmr.msra.gmra.mxu0 %vm244_vm0, %v232_v4  ;;  %1075 = vmatpush.msra.mxu3 %v228_v3 }
  0x18   : > { %1074 = vmatpush.msra.mxu2 %v228_v3  ;;  %1034 = vmatmul.msk.f32.vlgmr.msra.gmra.mxu1 %vm244_vm0, %v238_v12 }
  0x19   : > { %1038 = vmatmul.msk.f32.vlgmr.msra.gmra.mxu3 %vm244_vm0, %v242_v18  ;;  %1036 = vmatmul.msk.f32.vlgmr.msra.gmra.mxu2 %vm244_vm0, %v240_v56 }
  0x1f   : > { %1029 = vmatmul.msk.f32.gmra.mxu0 %vm244_vm0, %v233_v5 }
  0x20   : > { %1035 = vmatmul.msk.f32.gmra.mxu1 %vm244_vm0, %v239_v13 }
  0x21   : > { %1039 = vmatmul.msk.f32.gmra.mxu3 %vm244_vm0, %v243_v19 }
  0x27   : > { %1030 = vmatmul.msk.f32.gmra.mxu0 %vm244_vm0, %v234_v6  ;;  %v241_v6 = vld [vmem:[%s1369_s1 + $0x48] sm:$0xff] }
  0x28   : > { %1037 = vmatmul.msk.f32.gmra.mxu2 %vm244_vm0, %v241_v6 }
  0x2f   : > { %1031 = vmatmul.msk.f32.gmra.mxu0 %vm244_vm0, %v235_v7 }
  0x37   : > { %1032 = vmatmul.msk.f32.gmra.mxu0 %vm244_vm0, %v236_v8 }
  0x3f   : > { %1033 = vmatmul.msk.f32.gmra.mxu0 %vm244_vm0, %v237_v9 }
  0x94   : > { %v298_v10 = vpop.f32.mrf.mxu0 }
  0x95   : > { %335 = vxpose.xlu0.b32.start.end [1/1] (short) (narrow) %v298_v10, 16  ;;  %v316_v24 = vpop.f32.mrf.mxu1 }
  0x9c   : > { %v301_v11 = vpop.f32.mrf.mxu0  ;;  %v1259_v28 = vpop.f32.mrf.mxu3 }
  0x9d   : > { %v1253_v25 = vpop.f32.mrf.mxu1 }
  0xa4   : > { %v1237_v14 = vpop.f32.mrf.mxu0  ;;  %v1268_v37 = vpop.f32.mrf.mxu3 }
  0xa5   : > { %484 = vxpose.xlu0.b32.start.end [1/1] (short) (narrow) %v301_v11, 16 }
  0xac   : > { %v1239_v15 = vpop.f32.mrf.mxu0 }
  0xb4   : > { %v310_v16 = vpop.f32.mrf.mxu0 }
  0xb5   : > { %389 = vmatpush.msrb.mxu1 %v310_v16 }
  0xb7   : > { %680 = vmatpush.msra.mxu1 %v316_v24 }
  0xbc   : > { %v313_v17 = vpop.f32.mrf.mxu0 }
  0xbd   : > { %537 = vmatpush.msrb.mxu3 %v313_v17 }
 0x139   : > { %v351_v20 = vpop.trf.xlu0 }
 0x13a   : > { %1040 = vmatmul.msk.f32.vlgmr.msrb.gmra.mxu1 %vm367_vm1, %v351_v20 }
 0x141   : > { %v352_v21 = vpop.trf.xlu0 }
 0x142   : > { %1041 = vmatmul.msk.f32.gmra.mxu1 %vm367_vm1, %v352_v21 }
 0x149   : > { %v500_v22 = vpop.trf.xlu0 }
 0x14a   : > { %1045 = vmatmul.msk.f32.vlgmr.msrb.gmra.mxu3 %vm367_vm1, %v500_v22 }
 0x151   : > { %v501_v23 = vpop.trf.xlu0 }
 0x152   : > { %1046 = vmatmul.msk.f32.gmra.mxu3 %vm367_vm1, %v501_v23 }
 0x1b7   : > { %v391_v27 = vpop.f32.mrf.mxu1 }
 0x1b8   : > { %v397_v38 = vmul.f32 0.35355338, %v391_v27 }
 0x1ba   : > { %v403_v39 = vsel %vm1261_vm3, %v397_v38, -1e+30 }
 0x1bb   : > { %v406_v40 = vsel %vm405_vm4, %v403_v39, -inf }
 0x1bf   : > { %v394_v32 = vpop.f32.mrf.mxu1 }
 0x1c0   : > { %v398_v33 = vmul.f32 0.35355338, %v394_v32 }
 0x1c2   : > { %v404_v35 = vsel %vm1261_vm3, %v398_v33, -1e+30 }
 0x1c3   : > { %v409_v36 = vsel %vm405_vm4, %v404_v35, -inf }
 0x1c4   : > { %410 = vmax.xlane.f32.xlu1 %v409_v36 }
 0x1cc   : > { %407 = vmax.xlane.f32.xlu1 %v406_v40 }
 0x1cd   : > { %v539_v41 = vpop.f32.mrf.mxu3 }
 0x1ce   : > { %v545_v46 = vmul.f32 0.35355338, %v539_v41 }
 0x1d0   : > { %v547_v47 = vsel %vm1261_vm3, %v545_v46, -1e+30 }
 0x1d1   : > { %v549_v48 = vsel %vm405_vm4, %v547_v47, -inf }
 0x1d5   : > { %v542_v42 = vpop.f32.mrf.mxu3 }
 0x1d6   : > { %v546_v43 = vmul.f32 0.35355338, %v542_v42 }
 0x1d8   : > { %v548_v44 = vsel %vm1261_vm3, %v546_v43, -1e+30 }
 0x1d9   : > { %v552_v45 = vsel %vm405_vm4, %v548_v44, -inf }
 0x1da   : > { %553 = vmax.xlane.f32.xlu2 %v552_v45 }
 0x1e2   : > { %550 = vmax.xlane.f32.xlu2 %v549_v48 }
 0x237   : > { %v411_v49 = vpop.xlane.xlu1 %410 }
 0x238   : > { %v413_v50 = vsub.f32 %v404_v35, %v411_v49  ;;  %v322_v35 = vpop.f32.mrf.mxu2 }
 0x23a   : > { %v416_v51 = vmul.f32 1.442695, %v413_v50 }
 0x23c   : > { %1102 = vpow2.f32 %v416_v51 }
 0x23f   : > { %v408_v52 = vpop.xlane.xlu1 %407 }
 0x240   : > { %v412_v53 = vsub.f32 %v403_v39, %v408_v52 }
 0x242   : > { %v1103_v54 = vpop.eup %1102  ;;  %v414_v55 = vmul.f32 1.442695, %v412_v53 }
 0x243   : > { %v421_v57 = vsel %vm405_vm4, %v1103_v54, 0.0 }
 0x244   : > { %1104 = vpow2.f32 %v414_v55  ;;  %422 = vadd.xlane.f32.xlu1 %v421_v57 }
 0x24a   : > { %v1105_v58 = vpop.eup %1104 }
 0x24b   : > { %v418_v59 = vsel %vm405_vm4, %v1105_v58, 0.0 }
 0x24c   : > { %419 = vadd.xlane.f32.xlu2 %v418_v59 }
 0x24d   : > { %v554_v60 = vpop.xlane.xlu2 %553 }
 0x24e   : > { %v556_v61 = vsub.f32 %v548_v44, %v554_v60  ;;  %v325_v60 = vpop.f32.mrf.mxu2 }
 0x250   : > { %v559_v62 = vmul.f32 1.442695, %v556_v61 }
 0x252   : > { %1106 = vpow2.f32 %v559_v62 }
 0x255   : > { %v551_v63 = vpop.xlane.xlu2 %550 }
 0x256   : > { %v555_v0 = vsub.f32 %v547_v47, %v551_v63 }
 0x258   : > { %v1285_v1 = vpop.eup %1106  ;;  %v557_v2 = vmul.f32 1.442695, %v555_v0 }
 0x259   : > { %v564_v3 = vsel %vm405_vm4, %v1285_v1, 0.0 }
 0x25a   : > { %1108 = vpow2.f32 %v557_v2  ;;  %565 = vadd.xlane.f32.xlu0 %v564_v3 }
 0x260   : > { %v1289_v4 = vpop.eup %1108 }
 0x261   : > { %v561_v5 = vsel %vm405_vm4, %v1289_v4, 0.0 }
 0x262   : > { %562 = vadd.xlane.f32.xlu1 %v561_v5 }
 0x275   : > { %627 = vxpose.xlu2.b32.start.end [1/1] (short) (narrow) %v1237_v14, 16 }
 0x29c   : > { %770 = vxpose.xlu1.b32.start.end [1/1] (short) (narrow) %v1239_v15, 16 }
 0x2b7   : > { %v423_v7 = vpop.xlane.xlu1 %422 }
 0x2b8   : > { %1110 = vrcp.f32 %v423_v7  ;;  %v449_v12 = vand.u32 2147483648, %v423_v7  ;;  %v447_v16 = vand.u32 2147483647, %v423_v7  ;;  %vm443_vm6 = vweird.f32 %v423_v7 }
 0x2ba   : > { %v450_v18 = vor.u32 1.1754944e-38, %v449_v12  ;;  %vm448_vm8 = vcmp.eq.f32.partialorder %v447_v16, 8.507059e+37 }
 0x2be   : > { %v1111_v8 = vpop.eup %1110 }
 0x2bf   : > { %v439_v9 = vmul.f32 %v1111_v8, %v423_v7  ;;  %v420_v10 = vpop.xlane.xlu2 %419  ;;  %vm444_vm5 = vweird.f32 %v1111_v8 }
 0x2c0   : > { %1112 = vrcp.f32 %v420_v10  ;;  %vm445_vm7 = vmor %vm443_vm6, %vm444_vm5  ;;  %v435_v23 = vand.u32 2147483648, %v420_v10  ;;  %v433_v26 = vand.u32 2147483647, %v420_v10  ;;  %vm429_vm10 = vweird.f32 %v420_v10 }
 0x2c1   : > { %v440_v11 = vsub.f32 1.0, %v439_v9 }
 0x2c2   : > { %v436_v30 = vor.u32 1.1754944e-38, %v435_v23  ;;  %vm434_vm12 = vcmp.eq.f32.partialorder %v433_v26, 8.507059e+37 }
 0x2c3   : > { %v441_v13 = vmul.f32 %v1111_v8, %v440_v11 }
 0x2c5   : > { %v442_v14 = vadd.f32 %v1111_v8, %v441_v13 }
 0x2c6   : > { %v1113_v17 = vpop.eup %1112 }
 0x2c7   : > { %v425_v19 = vmul.f32 %v1113_v17, %v420_v10  ;;  %v446_v20 = vsel %vm445_vm7, %v1111_v8, %v442_v14  ;;  %vm430_vm9 = vweird.f32 %v1113_v17 }
 0x2c8   : > { %v451_v15 = vsel %vm448_vm8, %v450_v18, %v446_v20  ;;  %vm431_vm11 = vmor %vm429_vm10, %vm430_vm9 }
 0x2c9   : > { %v426_v21 = vsub.f32 1.0, %v425_v19  ;;  %v453_v22 = vmul.f32 %v1103_v54, %v451_v15 }
 0x2cb   : > { %v427_v24 = vmul.f32 %v1113_v17, %v426_v21  ;;  %1042 = vmatpush.xpose.msk.msrb.mxu2 %vm405_vm4, %v453_v22 }
 0x2cd   : > { %v566_v27 = vpop.xlane.xlu0 %565  ;;  %v428_v29 = vadd.f32 %v1113_v17, %v427_v24 }
 0x2ce   : > { %1114 = vrcp.f32 %v566_v27  ;;  %v592_v41 = vand.u32 2147483648, %v566_v27  ;;  %v590_v43 = vand.u32 2147483647, %v566_v27  ;;  %vm586_vm14 = vweird.f32 %v566_v27 }
 0x2cf   : > { %v432_v31 = vsel %vm431_vm11, %v1113_v17, %v428_v29 }
 0x2d0   : > { %v437_v32 = vsel %vm434_vm12, %v436_v30, %v432_v31  ;;  %v593_v46 = vor.u32 1.1754944e-38, %v592_v41  ;;  %vm591_vm0 = vcmp.eq.f32.partialorder %v590_v43, 8.507059e+37 }
 0x2d1   : > { %v452_v33 = vmul.f32 %v1105_v58, %v437_v32 }
 0x2d3   : > { %1043 = vmatpush.xpose.msk.msrb.mxu2 %vm405_vm4, %v452_v33 }
 0x2d4   : > { %v1115_v36 = vpop.eup %1114 }
 0x2d5   : > { %v582_v38 = vmul.f32 %v1115_v36, %v566_v27  ;;  %v563_v39 = vpop.xlane.xlu1 %562  ;;  %vm587_vm13 = vweird.f32 %v1115_v36 }
 0x2d6   : > { %1116 = vrcp.f32 %v563_v39  ;;  %1044 = vmatmul.msk.f32.vlgmr.msrb.gmra.mxu2 %vm405_vm4, %v322_v35  ;;  %vm588_vm15 = vmor %vm586_vm14, %vm587_vm13  ;;  %v578_v52 = vand.u32 2147483648, %v563_v39  ;;  %v576_v54 = vand.u32 2147483647, %v563_v39  ;;  %vm572_vm5 = vweird.f32 %v563_v39 }
 0x2d7   : > { %v583_v40 = vsub.f32 1.0, %v582_v38 }
 0x2d8   : > { %v579_v56 = vor.u32 1.1754944e-38, %v578_v52  ;;  %vm577_vm7 = vcmp.eq.f32.partialorder %v576_v54, 8.507059e+37 }
 0x2d9   : > { %v584_v42 = vmul.f32 %v1115_v36, %v583_v40 }
 0x2db   : > { %v585_v44 = vadd.f32 %v1115_v36, %v584_v42 }
 0x2dc   : > { %v1117_v45 = vpop.eup %1116 }
 0x2dd   : > { %v589_v47 = vsel %vm588_vm15, %v1115_v36, %v585_v44  ;;  %v568_v48 = vmul.f32 %v1117_v45, %v563_v39  ;;  %vm573_vm2 = vweird.f32 %v1117_v45 }
 0x2de   : > { %v594_v49 = vsel %vm591_vm0, %v593_v46, %v589_v47  ;;  %vm574_vm6 = vmor %vm572_vm5, %vm573_vm2 }
 0x2df   : > { %v569_v50 = vsub.f32 1.0, %v568_v48  ;;  %v596_v51 = vmul.f32 %v1285_v1, %v594_v49 }
 0x2e1   : > { %v570_v53 = vmul.f32 %v1117_v45, %v569_v50  ;;  %1047 = vmatpush.xpose.msk.msra.mxu2 %vm405_vm4, %v596_v51 }
 0x2e3   : > { %v571_v55 = vadd.f32 %v1117_v45, %v570_v53 }
 0x2e5   : > { %v575_v57 = vsel %vm574_vm6, %v1117_v45, %v571_v55 }
 0x2e6   : > { %v580_v58 = vsel %vm577_vm7, %v579_v56, %v575_v57 }
 0x2e7   : > { %v595_v59 = vmul.f32 %v1289_v4, %v580_v58 }
 0x2e9   : > { %1048 = vmatpush.xpose.msk.msra.mxu2 %vm405_vm4, %v595_v59 }
 0x2ec   : > { %1049 = vmatmul.msk.f32.vlgmr.msra.gmra.mxu2 %vm405_vm4, %v325_v60 }
 0x2ed   : > { %823 = vmatpush.msrb.mxu2 %v1253_v25 }
 0x30e   : > { %v643_v61 = vpop.trf.xlu2 }
 0x30f   : > { %1050 = vmatmul.msk.f32.vlgmr.msra.gmra.mxu1 %vm367_vm1, %v643_v61 }
 0x316   : > { %v644_v62 = vpop.trf.xlu2 }
 0x317   : > { %1051 = vmatmul.msk.f32.gmra.mxu1 %vm367_vm1, %v644_v62 }
 0x340   : > { %v786_v63 = vpop.trf.xlu1 }
 0x341   : > { %1055 = vmatmul.msk.f32.vlgmr.msrb.gmra.mxu2 %vm367_vm1, %v786_v63 }
 0x348   : > { %v787_v0 = vpop.trf.xlu1 }
 0x349   : > { %1056 = vmatmul.msk.f32.gmra.mxu2 %vm367_vm1, %v787_v0 }
 0x359   : > { %v480_v25 = vpop.f32.mrf.mxu2 }
 0x35a   : > { %483 = vst.msk [vmem:[%s1317_s27] sm:$0xff] %vm405_vm4, %v480_v25 }
 0x36f   : > { %v623_v1 = vpop.f32.mrf.mxu2 }
 0x370   : > { %626 = vst.msk [vmem:[%s1317_s27 + $0x8] sm:$0xff] %vm405_vm4, %v623_v1 }
 0x38c   : > { %v682_v2 = vpop.f32.mrf.mxu1 }
 0x38d   : > { %v688_v3 = vmul.f32 0.35355338, %v682_v2 }
 0x38f   : > { %v690_v4 = vsel %vm1261_vm3, %v688_v3, -1e+30 }
 0x390   : > { %v692_v5 = vsel %vm405_vm4, %v690_v4, -inf }
 0x391   : > { %693 = vmax.xlane.f32.xlu1 %v692_v5 }
 0x394   : > { %v685_v6 = vpop.f32.mrf.mxu1 }
 0x395   : > { %v689_v7 = vmul.f32 0.35355338, %v685_v6 }
 0x397   : > { %v691_v8 = vsel %vm1261_vm3, %v689_v7, -1e+30 }
 0x398   : > { %v695_v9 = vsel %vm405_vm4, %v691_v8, -inf }
 0x399   : > { %696 = vmax.xlane.f32.xlu2 %v695_v9 }
 0x3c4   : > { %v825_v10 = vpop.f32.mrf.mxu2 }
 0x3c5   : > { %v831_v14 = vmul.f32 0.35355338, %v825_v10 }
 0x3c7   : > { %v833_v17 = vsel %vm1261_vm3, %v831_v14, -1e+30 }
 0x3c8   : > { %v835_v18 = vsel %vm405_vm4, %v833_v17, -inf }
 0x3cc   : > { %v828_v11 = vpop.f32.mrf.mxu2 }
 0x3cd   : > { %v832_v12 = vmul.f32 0.35355338, %v828_v11 }
 0x3cf   : > { %v834_v13 = vsel %vm1261_vm3, %v832_v12, -1e+30 }
 0x3d0   : > { %v838_v16 = vsel %vm405_vm4, %v834_v13, -inf }
 0x3d1   : > { %839 = vmax.xlane.f32.xlu0 %v838_v16 }
 0x3d9   : > { %836 = vmax.xlane.f32.xlu0 %v835_v18 }
 0x404   : > { %v694_v19 = vpop.xlane.xlu1 %693 }
 0x405   : > { %v698_v21 = vsub.f32 %v690_v4, %v694_v19 }
 0x407   : > { %v700_v23 = vmul.f32 1.442695, %v698_v21 }
 0x40c   : > { %v697_v20 = vpop.xlane.xlu2 %696 }
 0x40d   : > { %v699_v15 = vsub.f32 %v691_v8, %v697_v20 }
 0x40f   : > { %v702_v22 = vmul.f32 1.442695, %v699_v15 }
 0x411   : > { %1118 = vpow2.f32 %v702_v22 }
 0x412   : > { %1120 = vpow2.f32 %v700_v23 }
 0x417   : > { %v1119_v24 = vpop.eup %1118 }
 0x418   : > { %v707_v26 = vsel %vm405_vm4, %v1119_v24, 0.0  ;;  %v1121_v27 = vpop.eup %1120 }
 0x419   : > { %708 = vadd.xlane.f32.xlu0 %v707_v26  ;;  %v704_v29 = vsel %vm405_vm4, %v1121_v27, 0.0 }
 0x421   : > { %705 = vadd.xlane.f32.xlu0 %v704_v29 }
 0x444   : > { %v840_v34 = vpop.xlane.xlu0 %839 }
 0x445   : > { %v842_v30 = vsub.f32 %v834_v13, %v840_v34 }
 0x447   : > { %v845_v31 = vmul.f32 1.442695, %v842_v30 }
 0x449   : > { %1122 = vpow2.f32 %v845_v31 }
 0x44c   : > { %v837_v32 = vpop.xlane.xlu0 %836 }
 0x44d   : > { %v841_v33 = vsub.f32 %v833_v17, %v837_v32 }
 0x44f   : > { %v1337_v35 = vpop.eup %1122  ;;  %v843_v36 = vmul.f32 1.442695, %v841_v33 }
 0x450   : > { %v850_v38 = vsel %vm405_vm4, %v1337_v35, 0.0 }
 0x451   : > { %1124 = vpow2.f32 %v843_v36  ;;  %851 = vadd.xlane.f32.xlu0 %v850_v38 }
 0x457   : > { %v1341_v39 = vpop.eup %1124 }
 0x458   : > { %v847_v40 = vsel %vm405_vm4, %v1341_v39, 0.0 }
 0x459   : > { %848 = vadd.xlane.f32.xlu0 %v847_v40 }
 0x48c   : > { %v709_v41 = vpop.xlane.xlu0 %708 }
 0x48d   : > { %1126 = vrcp.f32 %v709_v41  ;;  %v735_v46 = vand.u32 2147483648, %v709_v41  ;;  %v733_v48 = vand.u32 2147483647, %v709_v41  ;;  %vm729_vm3 = vweird.f32 %v709_v41 }
 0x48f   : > { %v736_v51 = vor.u32 1.1754944e-38, %v735_v46  ;;  %vm734_vm9 = vcmp.eq.f32.partialorder %v733_v48, 8.507059e+37 }
 0x493   : > { %v1127_v42 = vpop.eup %1126 }
 0x494   : > { %v725_v43 = vmul.f32 %v1127_v42, %v709_v41  ;;  %v706_v44 = vpop.xlane.xlu0 %705  ;;  %vm730_vm1 = vweird.f32 %v1127_v42 }
 0x495   : > { %1128 = vrcp.f32 %v706_v44  ;;  %vm731_vm8 = vmor %vm729_vm3, %vm730_vm1  ;;  %v721_v57 = vand.u32 2147483648, %v706_v44  ;;  %v719_v59 = vand.u32 2147483647, %v706_v44  ;;  %vm715_vm11 = vweird.f32 %v706_v44 }
 0x496   : > { %v726_v45 = vsub.f32 1.0, %v725_v43 }
 0x497   : > { %v722_v61 = vor.u32 1.1754944e-38, %v721_v57  ;;  %vm720_vm13 = vcmp.eq.f32.partialorder %v719_v59, 8.507059e+37 }
 0x498   : > { %v727_v47 = vmul.f32 %v1127_v42, %v726_v45 }
 0x49a   : > { %v728_v49 = vadd.f32 %v1127_v42, %v727_v47 }
 0x49b   : > { %v1129_v50 = vpop.eup %1128 }
 0x49c   : > { %v732_v52 = vsel %vm731_vm8, %v1127_v42, %v728_v49  ;;  %v711_v53 = vmul.f32 %v1129_v50, %v706_v44  ;;  %vm716_vm10 = vweird.f32 %v1129_v50 }
 0x49d   : > { %v737_v54 = vsel %vm734_vm9, %v736_v51, %v732_v52  ;;  %vm717_vm12 = vmor %vm715_vm11, %vm716_vm10 }
 0x49e   : > { %v712_v55 = vsub.f32 1.0, %v711_v53  ;;  %v739_v56 = vmul.f32 %v1119_v24, %v737_v54 }
 0x4a0   : > { %v713_v58 = vmul.f32 %v1129_v50, %v712_v55  ;;  %1052 = vmatpush.xpose.msk.msra.mxu3 %vm405_vm4, %v739_v56 }
 0x4a2   : > { %v714_v60 = vadd.f32 %v1129_v50, %v713_v58 }
 0x4a4   : > { %v718_v62 = vsel %vm717_vm12, %v1129_v50, %v714_v60 }
 0x4a5   : > { %v723_v63 = vsel %vm720_vm13, %v722_v61, %v718_v62 }
 0x4a6   : > { %v738_v0 = vmul.f32 %v1121_v27, %v723_v63 }
 0x4a8   : > { %1053 = vmatpush.xpose.msk.msra.mxu3 %vm405_vm4, %v738_v0 }
 0x4ab   : > { %1054 = vmatmul.msk.f32.vlgmr.msra.gmra.mxu3 %vm405_vm4, %v1259_v28 }
 0x4c4   : > { %v852_v25 = vpop.xlane.xlu0 %851 }
 0x4c5   : > { %1130 = vrcp.f32 %v852_v25  ;;  %v878_v5 = vand.u32 2147483648, %v852_v25  ;;  %v876_v7 = vand.u32 2147483647, %v852_v25  ;;  %vm872_vm15 = vweird.f32 %v852_v25 }
 0x4c7   : > { %v879_v10 = vor.u32 1.1754944e-38, %v878_v5  ;;  %vm877_vm2 = vcmp.eq.f32.partialorder %v876_v7, 8.507059e+37 }
 0x4cb   : > { %v1131_v1 = vpop.eup %1130 }
 0x4cc   : > { %v868_v2 = vmul.f32 %v1131_v1, %v852_v25  ;;  %v849_v3 = vpop.xlane.xlu0 %848  ;;  %vm873_vm14 = vweird.f32 %v1131_v1 }
 0x4cd   : > { %1132 = vrcp.f32 %v849_v3  ;;  %vm874_vm0 = vmor %vm872_vm15, %vm873_vm14  ;;  %v864_v14 = vand.u32 2147483648, %v849_v3  ;;  %v862_v18 = vand.u32 2147483647, %v849_v3  ;;  %vm858_vm6 = vweird.f32 %v849_v3 }
 0x4ce   : > { %v869_v4 = vsub.f32 1.0, %v868_v2 }
 0x4cf   : > { %v865_v20 = vor.u32 1.1754944e-38, %v864_v14  ;;  %vm863_vm1 = vcmp.eq.f32.partialorder %v862_v18, 8.507059e+37 }
 0x4d0   : > { %v870_v6 = vmul.f32 %v1131_v1, %v869_v4 }
 0x4d2   : > { %v871_v8 = vadd.f32 %v1131_v1, %v870_v6 }
 0x4d3   : > { %v1133_v9 = vpop.eup %1132 }
 0x4d4   : > { %v875_v11 = vsel %vm874_vm0, %v1131_v1, %v871_v8  ;;  %v854_v12 = vmul.f32 %v1133_v9, %v849_v3  ;;  %vm859_vm5 = vweird.f32 %v1133_v9 }
 0x4d5   : > { %v880_v28 = vsel %vm877_vm2, %v879_v10, %v875_v11  ;;  %vm860_vm7 = vmor %vm858_vm6, %vm859_vm5 }
 0x4d6   : > { %v855_v13 = vsub.f32 1.0, %v854_v12  ;;  %v882_v16 = vmul.f32 %v1337_v35, %v880_v28 }
 0x4d8   : > { %v856_v17 = vmul.f32 %v1133_v9, %v855_v13  ;;  %1057 = vmatpush.xpose.msk.msrb.mxu3 %vm405_vm4, %v882_v16 }
 0x4da   : > { %v857_v19 = vadd.f32 %v1133_v9, %v856_v17 }
 0x4dc   : > { %v861_v15 = vsel %vm860_vm7, %v1133_v9, %v857_v19 }
 0x4dd   : > { %v866_v21 = vsel %vm863_vm1, %v865_v20, %v861_v15 }
 0x4de   : > { %v881_v22 = vmul.f32 %v1341_v39, %v866_v21 }
 0x4e0   : > { %1058 = vmatpush.xpose.msk.msrb.mxu3 %vm405_vm4, %v881_v22 }
 0x4e3   : > { %1059 = vmatmul.msk.f32.vlgmr.msrb.gmra.mxu3 %vm405_vm4, %v1268_v37 }
 0x52e   : > { %v766_v23 = vpop.f32.mrf.mxu3 }
 0x52f   : > { %769 = vst.msk [vmem:[%s1317_s27 + $0x10] sm:$0xff] %vm405_vm4, %v766_v23 }
 0x566   : > { %v909_v24 = vpop.f32.mrf.mxu3 }
 0x567   : > { %912 = vst.msk [vmem:[%s1317_s27 + $0x18] sm:$0xff] %vm405_vm4, %v909_v24 }
 0x568 PF: > { %s13_s14 = sadd.s32 1, %s1156_s14   ;;  %s1374_s12 = smov %s1152_s13 }
 0x569   : > { %p10_p5 = scmp.ge.s32.totalorder %s13_s14, 4   ;;  %s1375_s13 = smov %s1377_s15 }
 0x56b   :  { %12 = sbr.rel (!%p10_p5) target bundleno = 2 (0x2), region = 68 }

</bundles_post_ra>
